<compile_context>
chip_gen: v7x
topology: tpu7x:2x2x1
jax: 0.10.0
libtpu: 0.0.40
codegen_flags: <defaults>
</compile_context>

<pallas_src>
import functools

import jax
import jax.numpy as jnp
from jax import lax
from jax.experimental import pallas as pl
from jax.experimental.pallas import tpu as pltpu


def _round_up(x, m):
    return (x + m - 1) // m * m


def _tpu_kind():
    try:
        dev = jax.devices()[0]
        if dev.platform != "tpu":
            return ""
        return dev.device_kind.lower()
    except Exception:
        return ""


def _block_spec(shape, index_map, pipeline_mode=None):
    if pipeline_mode is None:
        return pl.BlockSpec(shape, index_map)
    try:
        return pl.BlockSpec(shape, index_map, pipeline_mode=pipeline_mode)
    except TypeError:  # older jax without pipeline_mode kwarg
        return pl.BlockSpec(shape, index_map)


def _pairwise_sim_kernel(*refs, normalize_input, skip_max):
    if normalize_input:
        f0_ref, f1_ref, rs_ref, cs_ref, out_ref = refs
    else:
        invt_ref, f0_ref, f1_ref, out_ref = refs

    f0 = f0_ref[0]            # (TN, Dp)  raw input dtype -> full-rate MXU
    f1 = f1_ref[0]            # (M,  Dp)  resident across the N grid axis

    # Contraction over the last dim of BOTH operands: no transpose pass.
    sim = lax.dot_general(
        f0, f1,
        dimension_numbers=(((1,), (1,)), ((), ())),
        preferred_element_type=jnp.float32)                  # (TN, M) f32

    if normalize_input:
        # row_scale already contains 1/temp; col_scale is feats1's rsqrt norm.
        sim = sim * rs_ref[0] * cs_ref[0]                    # (TN,1) and (1,M) broadcasts
    else:
        sim = sim * invt_ref[0]                              # SMEM scalar 1/temp

    if not skip_max:
        sim = sim - jnp.max(sim, axis=-1, keepdims=True)
    e = jnp.exp(sim)
    inv_denom = pl.reciprocal(jnp.sum(e, axis=-1, keepdims=True), approx=False)
    out_ref[0, :, :] = (e * inv_denom).astype(out_ref.dtype)


def pairwise_similarity(feats0, feats1, temp, *, temp_min=1e-4,
                        normalize_input=True, matmul_dtype=jnp.bfloat16,
                        out_dtype=jnp.float32, block_n=None):
    """Pallas implementation of PairwiseSimilarity.forward.

    feats0: [B, N, D], feats1: [B, M, D] -> [B, N, M] softmax probabilities.
    matmul_dtype: operand dtype for the MXU (None keeps the input dtype).
    """
    B, N, D = feats0.shape
    Bm, M, Dm = feats1.shape
    assert B == Bm and D == Dm

    kind = _tpu_kind()
    is_v7 = "v7" in kind
    is_v5 = "v5" in kind
    if block_n is None:
        block_n = 128 if is_v5 else 256          # match native MXU tile per generation

    # get_temp(): clamp(temp**2, min=temp_min); fold 1/temp into the scales.
    temp_eff = jnp.maximum(jnp.asarray(temp, jnp.float32) ** 2, jnp.float32(temp_min))
    inv_temp = (1.0 / temp_eff).astype(jnp.float32)

    # Skip the row-max subtraction only when the logits are provably bounded.
    skip_max = False
    if normalize_input and isinstance(temp, (int, float)):
        t_eff = max(float(temp) ** 2, float(temp_min))
        skip_max = (1.0 / t_eff) <= 60.0

    # Hoisted L2-norm scales (f32, from the original inputs).
    if normalize_input:
        f0_32 = feats0.astype(jnp.float32)
        f1_32 = feats1.astype(jnp.float32)
        eps2 = jnp.float32(1e-24)   # matches torch F.normalize eps=1e-12 on the norm
        row_scale = (inv_temp * lax.rsqrt(jnp.maximum(
            jnp.sum(f0_32 * f0_32, axis=-1, keepdims=True), eps2))
                     ).astype(jnp.float32)                                    # (B, N, 1)
        col_scale = lax.rsqrt(jnp.maximum(
            jnp.sum(f1_32 * f1_32, axis=-1), eps2))[:, None, :].astype(jnp.float32)  # (B, 1, M)

    # MXU operand dtype (bf16 halves feats DMA and v7x-critical feats1 residency).
    if matmul_dtype is not None and feats0.dtype != jnp.dtype(matmul_dtype):
        feats0 = feats0.astype(matmul_dtype)
        feats1 = feats1.astype(matmul_dtype)

    # Lane-align the contraction dim (zeros change neither dots nor norms).
    D_pad = _round_up(D, 128)
    if D_pad != D:
        feats0 = jnp.pad(feats0, ((0, 0), (0, 0), (0, D_pad - D)))
        feats1 = jnp.pad(feats1, ((0, 0), (0, 0), (0, D_pad - D)))

    in_bytes = feats0.dtype.itemsize
    out_bytes = jnp.dtype(out_dtype).itemsize

    # feats1 buffering per generation (its block index only changes at b boundaries).
    f1_block_bytes = M * D_pad * in_bytes
    has_buffered = hasattr(pl, "Buffered")
    if is_v7 and has_buffered:
        f1_bufs, f1_pm = 1, pl.Buffered(1)       # single-buffer: save v7x's 64 MiB VMEM
    elif is_v5 and B > 1 and f1_block_bytes > (4 << 20) and has_buffered:
        f1_bufs, f1_pm = 3, pl.Buffered(3)       # hide the per-batch feats1 DMA
    else:
        f1_bufs, f1_pm = 2, None

    vmem_cap = (52 << 20) if (is_v7 or not kind) else (100 << 20)
    m_lanes = _round_up(M, 128)

    def vmem_estimate(tn):
        b = 2 * tn * D_pad * in_bytes                      # feats0 tile, double-buffered
        b += f1_bufs * M * D_pad * in_bytes                # resident feats1 block
        b += 2 * tn * m_lanes * out_bytes                  # output tile, double-buffered
        b += 3 * tn * m_lanes * 4                          # sim / exp f32 temporaries
        if normalize_input:
            b += 2 * tn * 128 * 4 + 2 * 8 * m_lanes * 4    # row / col scales (padded)
        return b

    # Pick TN so no output padding/slicing is needed: full-extent N, or a
    # multiple-of-8 divisor of N that fits the VMEM budget.
    candidates = []
    if N <= block_n:
        candidates.append(N)
    t = (min(block_n, N) // 8) * 8
    while t >= 8:
        if N % t == 0 and t not in candidates:
            candidates.append(t)
        t -= 8

    n_sliced = False
    if candidates:
        TN = None
        for c in candidates:
            if vmem_estimate(c) <= vmem_cap:
                TN = c
                break
        if TN is None:
            # TODO(synk): add an M grid axis with an online-softmax accumulator when
            # even the smallest N-tile plus resident feats1 exceeds the VMEM budget.
            TN = candidates[-1]
        N_pad = N
    else:
        # Rare fallback (N > block_n with no multiple-of-8 divisor): pad + slice.
        TN = block_n
        N_pad = _round_up(N, TN)
        feats0 = jnp.pad(feats0, ((0, 0), (0, N_pad - N), (0, 0)))
        if normalize_input:
            row_scale = jnp.pad(row_scale, ((0, 0), (0, N_pad - N), (0, 0)))
        n_sliced = True

    grid = (B, N_pad // TN)

    if normalize_input:
        inputs = (feats0, feats1, row_scale, col_scale)
        in_specs = [
            pl.BlockSpec((1, TN, D_pad), lambda b, n: (b, n, 0)),
            _block_spec((1, M, D_pad), lambda b, n: (b, 0, 0), f1_pm),
            pl.BlockSpec((1, TN, 1), lambda b, n: (b, n, 0)),
            pl.BlockSpec((1, 1, M), lambda b, n: (b, 0, 0)),
        ]
    else:
        inputs = (inv_temp.reshape(1), feats0, feats1)
        in_specs = [
            pl.BlockSpec(memory_space=pltpu.SMEM),
            pl.BlockSpec((1, TN, D_pad), lambda b, n: (b, n, 0)),
            _block_spec((1, M, D_pad), lambda b, n: (b, 0, 0), f1_pm),
        ]

    kernel = functools.partial(_pairwise_sim_kernel,
                               normalize_input=normalize_input,
                               skip_max=skip_max)

    vmem_limit = int(min(vmem_cap,
                         max(int(vmem_estimate(TN) * 1.5) + (4 << 20), 32 << 20)))

    # On 2-TensorCore parts (v7x) split across cores on the batch axis so both
    # cores do not each DMA/hold a full feats1 copy; single-TC parts don't care.
    dim_sem = ("parallel", "arbitrary") if B >= 2 else ("parallel", "parallel")

    out = pl.pallas_call(
        kernel,
        out_shape=jax.ShapeDtypeStruct((B, N_pad, M), out_dtype),
        grid_spec=pl.GridSpec(
            grid=grid,
            in_specs=in_specs,
            out_specs=pl.BlockSpec((1, TN, M), lambda b, n: (b, n, 0)),
        ),
        compiler_params=pltpu.CompilerParams(
            dimension_semantics=dim_sem,
            vmem_limit_bytes=vmem_limit),
    )(*inputs)

    if n_sliced:
        out = out[:, :N, :]
    return out


def _reference(feats0, feats1, temp, temp_min=1e-4, normalize_input=True):
    f0 = feats0.astype(jnp.float32)
    f1 = feats1.astype(jnp.float32)
    if normalize_input:
        f0 = f0 / jnp.maximum(jnp.linalg.norm(f0, axis=-1, keepdims=True), 1e-12)
        f1 = f1 / jnp.maximum(jnp.linalg.norm(f1, axis=-1, keepdims=True), 1e-12)
    sim = jnp.einsum("bnd,bmd->bnm", f0, f1)
    t = jnp.maximum(jnp.float32(temp) ** 2, temp_min)
    return jax.nn.softmax(sim / t, axis=-1)


if __name__ == "__main__":
    # Deterministic synthetic inputs (module's __init__: temp_init=1.0).
    B, N, M, D = 2, 8, 8, 32
    key = jax.random.PRNGKey(0)
    k0, k1 = jax.random.split(key)
    feats0 = jax.random.normal(k0, (B, N, D), dtype=jnp.float32)
    feats1 = jax.random.normal(k1, (B, M, D), dtype=jnp.float32)
    temp_init = 1.0  # nn.Parameter(torch.tensor(1.0)) -- deterministic init

    ref = _reference(feats0, feats1, temp_init)

    # Default path: bf16 MXU operands, f32 norms/softmax.
    out = jax.block_until_ready(
        pairwise_similarity(feats0, feats1, temp_init,
                            temp_min=1e-4, normalize_input=True))
    assert out.shape == (B, N, M)
    assert jnp.allclose(out, ref, atol=5e-3, rtol=5e-3), "mismatch (bf16 matmul)"
    # Exact reciprocal in the epilogue -> rows sum to 1 to f32 precision.
    assert jnp.allclose(jnp.sum(out, axis=-1), 1.0, atol=1e-4), "rows != 1"

    # Full-precision (f32 MXU operands) path.
    out_f32 = jax.block_until_ready(
        pairwise_similarity(feats0, feats1, temp_init, matmul_dtype=None))
    assert jnp.allclose(out_f32, ref, atol=2e-4, rtol=2e-4), "mismatch (f32 matmul)"

    # normalize_input=False path.
    out2 = jax.block_until_ready(
        pairwise_similarity(feats0, feats1, temp_init,
                            normalize_input=False, matmul_dtype=None))
    ref2 = _reference(feats0, feats1, temp_init, normalize_input=False)
    assert jnp.allclose(out2, ref2, atol=2e-4, rtol=2e-4), "mismatch (no-normalize)"

    print("KERNEL_OK")
</pallas_src>

<mosaic_0001>
module attributes {stable_mosaic.version = 11 : i64} {
  func.func @_pairwise_sim_kernel(%arg0: i32, %arg1: i32, %arg2: memref<1x8x128xbf16, #tpu.memory_space<vmem>>, %arg3: memref<1x8x128xbf16, #tpu.memory_space<vmem>>, %arg4: memref<1x8x1xf32, #tpu.memory_space<vmem>>, %arg5: memref<1x1x8xf32, #tpu.memory_space<vmem>>, %arg6: memref<1x8x8xf32, #tpu.memory_space<vmem>>) attributes {dimension_semantics = [#tpu.dimension_semantics<parallel>, #tpu.dimension_semantics<arbitrary>], iteration_bounds = array<i64: 2, 1>, scalar_prefetch = 0 : i64, scratch_operands = 0 : i64, tpu.core_type = #tpu.core_type<tc>, window_params = [{transform_indices = @transform_0, window_bounds = array<i64: 1, 8, 128>}, {transform_indices = @transform_1, window_bounds = array<i64: 1, 8, 128>}, {transform_indices = @transform_2, window_bounds = array<i64: 1, 8, 1>}, {transform_indices = @transform_3, window_bounds = array<i64: 1, 1, 8>}, {transform_indices = @transform_4, window_bounds = array<i64: 1, 8, 8>}]} {
    %c0 = arith.constant 0 : index
    %c0_0 = arith.constant 0 : index
    %c0_1 = arith.constant 0 : index
    %0 = vector.load %arg2[%c0, %c0_0, %c0_1] : memref<1x8x128xbf16, #tpu.memory_space<vmem>>, vector<1x8x128xbf16>
    %1 = vector.shape_cast %0 : vector<1x8x128xbf16> to vector<8x128xbf16>
    %c0_2 = arith.constant 0 : index
    %c0_3 = arith.constant 0 : index
    %c0_4 = arith.constant 0 : index
    %2 = vector.load %arg3[%c0_2, %c0_3, %c0_4] : memref<1x8x128xbf16, #tpu.memory_space<vmem>>, vector<1x8x128xbf16>
    %3 = vector.shape_cast %2 : vector<1x8x128xbf16> to vector<8x128xbf16>
    %cst = arith.constant dense<0.000000e+00> : vector<8x8xf32>
    %4 = tpu.matmul %1, %3, %cst {dimension_numbers = #tpu.dot_dimension_numbers<[1], [1], [0], [0], [0, 0, 1, 0], [], []>} : vector<8x128xbf16>, vector<8x128xbf16>, vector<8x8xf32> -> vector<8x8xf32>
    %c0_5 = arith.constant 0 : index
    %c0_6 = arith.constant 0 : index
    %c0_7 = arith.constant 0 : index
    %5 = vector.load %arg4[%c0_5, %c0_6, %c0_7] : memref<1x8x1xf32, #tpu.memory_space<vmem>>, vector<1x8x1xf32>
    %6 = vector.shape_cast %5 : vector<1x8x1xf32> to vector<8x1xf32>
    %7 = vector.broadcast %6 : vector<8x1xf32> to vector<8x8xf32>
    %8 = arith.mulf %4, %7 : vector<8x8xf32>
    %c0_8 = arith.constant 0 : index
    %c0_9 = arith.constant 0 : index
    %c0_10 = arith.constant 0 : index
    %9 = vector.load %arg5[%c0_8, %c0_9, %c0_10] : memref<1x1x8xf32, #tpu.memory_space<vmem>>, vector<1x1x8xf32>
    %10 = vector.shape_cast %9 : vector<1x1x8xf32> to vector<1x8xf32>
    %11 = vector.broadcast %10 : vector<1x8xf32> to vector<8x8xf32>
    %12 = arith.mulf %8, %11 : vector<8x8xf32>
    %13 = math.exp %12 : vector<8x8xf32>
    %cst_11 = arith.constant dense<0.000000e+00> : vector<8xf32>
    %14 = vector.multi_reduction <add>, %13, %cst_11 [1] : vector<8x8xf32> to vector<8xf32>
    %15 = vector.shape_cast %14 : vector<8xf32> to vector<8x1xf32>
    %16 = tpu.reciprocal %15 : vector<8x1xf32> -> vector<8x1xf32>
    %17 = vector.broadcast %16 : vector<8x1xf32> to vector<8x8xf32>
    %18 = arith.mulf %13, %17 : vector<8x8xf32>
    %c0_12 = arith.constant 0 : index
    %c0_13 = arith.constant 0 : index
    %c0_14 = arith.constant 0 : index
    %19 = vector.load %arg6[%c0_12, %c0_13, %c0_14] : memref<1x8x8xf32, #tpu.memory_space<vmem>>, vector<1x8x8xf32>
    %20 = vector.shape_cast %19 : vector<1x8x8xf32> to vector<8x8xf32>
    %21 = vector.shape_cast %18 : vector<8x8xf32> to vector<1x8x8xf32>
    tpu.vector_store %arg6[%c0_12, %c0_13, %c0_14], %21 {strides = array<i32>} : memref<1x8x8xf32, #tpu.memory_space<vmem>>, vector<1x8x8xf32>,
    return
  }
  func.func @transform_0(%arg0: i32, %arg1: i32) -> (i32, i32, i32) {
    %c0_i32 = arith.constant 0 : i32
    %c0_i32_0 = arith.constant 0 : i32
    return %arg0, %arg1, %c0_i32 : i32, i32, i32
  }
  func.func @transform_1(%arg0: i32, %arg1: i32) -> (i32, i32, i32) {
    %c0_i32 = arith.constant 0 : i32
    %c0_i32_0 = arith.constant 0 : i32
    %c0_i32_1 = arith.constant 0 : i32
    return %arg0, %c0_i32, %c0_i32_0 : i32, i32, i32
  }
  func.func @transform_2(%arg0: i32, %arg1: i32) -> (i32, i32, i32) {
    %c0_i32 = arith.constant 0 : i32
    %c0_i32_0 = arith.constant 0 : i32
    return %arg0, %arg1, %c0_i32 : i32, i32, i32
  }
  func.func @transform_3(%arg0: i32, %arg1: i32) -> (i32, i32, i32) {
    %c0_i32 = arith.constant 0 : i32
    %c0_i32_0 = arith.constant 0 : i32
    %c0_i32_1 = arith.constant 0 : i32
    return %arg0, %c0_i32, %c0_i32_0 : i32, i32, i32
  }
  func.func @transform_4(%arg0: i32, %arg1: i32) -> (i32, i32, i32) {
    %c0_i32 = arith.constant 0 : i32
    %c0_i32_0 = arith.constant 0 : i32
    return %arg0, %arg1, %c0_i32 : i32, i32, i32
  }
}

</mosaic_0001>

<bundles_post_ra>
// kernel: tpu_custom_call.1
= control target key start
LH: loop header
LB: loop body
LE: loop exit
PB: predicated region body
PF: predicated region fallthrough
CT: control target
= control target key end

     0   :  { %9 = vsyncpa [#allocation3], 0  ;;  %s781_s0 = inlined_call_operand.vmem [shape: bf16[2,8,128], index: 0, kind: input, shape index: {}]   ;;  %s782_s1 = inlined_call_operand.vmem [shape: bf16[2,8,128], index: 1, kind: input, shape index: {}]   ;;  %s783_s2 = inlined_call_operand.vmem [shape: f32[2,8,1], index: 2, kind: input, shape index: {}]   ;;  %s784_s3 = inlined_call_operand.vmem [shape: f32[2,1,8], index: 3, kind: input, shape index: {}]   ;;  %s785_s4 = inlined_call_operand.hbm [shape: f32[2,8,8], index: 4, kind: output, shape index: {}]  }
   0x1   :  { %11 = vsyncpa [#allocation3 + $0x1], 0  ;;  %s660_s15 = smov 0   ;;  %s662_s16 = smov 0  }
   0x2   :  { %s664_s17 = smov 0   ;;  %s666_s18 = smov 0  }
   0x3   :  { %s668_s19 = smov 0   ;;  %s670_s20 = smov 0  }
   0x4 LB: > { %s466_s21 = sadd.s32 4294967295, %s629_s20   ;;  %s467_s22 = sadd.s32 4294967294, %s629_s20   ;;  %s629_s20 = sphi %s670_s20, %s17_s20   ;;  %s625_s19 = sphi %s668_s19, %s792_s19   ;;  %s621_s18 = sphi %s666_s18, %s791_s18   ;;  %s617_s17 = sphi %s664_s17, %s790_s17   ;;  %s613_s16 = sphi %s662_s16, %s789_s16   ;;  %s609_s15 = sphi %s660_s15, %s788_s15  }
   0x5   : > { %s29_s23 = sadd.s32 1, %s625_s19  ;;  %s146_s24 = sadd.s32 1, %s617_s17 }
   0x6   : > { %p31_p0 = scmp.ge.s32.totalorder %s29_s23, 2  ;;  %p156_p1 = scmp.ne.s32.totalorder %s617_s17, %s613_s16 }
   0x7   : > { %p157_p2 = scmp.eq.s32.totalorder %s466_s21, 1  ;;  %p162_p3 = scmp.ne.s32.totalorder %s613_s16, %s609_s15 }
   0x8   : > { %s794_s23 = smov (%p31_p0, %s29_s23), 0  ;;  %p163_p5 = scmp.eq.s32.totalorder %s467_s22, 1 }
   0x9   : > { %p700_p4 = por %p157_p2, %p156_p1  ;;  %s141_s26 = ssub.s32 %s625_s19, %s794_s23 }
   0xa   : > { %p470_p6 = scmp.ge.s32.totalorder %s629_s20, 1  ;;  %p144_p7 = scmp.eq.s32.totalorder %s141_s26, 0 }
   0xb   : > { %p707_p8 = por %p163_p5, %p162_p3  ;;  %p214_p9 = scmp.lt.s32.totalorder %s629_s20, 3 }
   0xc   : > { %s713_s28 = scalar_select %p144_p7, %s617_s17, %s146_s24  }
   0xd   : > { %p215_p10 = pnand %p470_p6, %p214_p9 }
   0xe   : > { %p256_p11 = scmp.lt.s32.totalorder (!%p215_p10), %s621_s18, 1  ;;  %v631_v0 = vmov (!%p215_p10), 0.0   ;;  %vm632_vm0 = vmmov (!%p215_p10), 0   ;;  %v633_v1 = vmov (!%p215_p10), 0   ;;  %vm337_vm1 = vcmask (!%p215_p10), 64512   ;;  %s253_s26 = sand.u32 (!%p215_p10), 1, %s613_s16  }
   0xf   : > { %218 = sbr.rel (%p215_p10) target bundleno = 433 (0x1b1), region = 36  ;;  %482 = vmatprep.subr.bf16.mxu0 (!%p215_p10), %v631_v0  ;;  %484 = vmatprep.mubr.msk.bf16.mxu0 (!%p215_p10), %vm632_vm0, %v631_v0  ;;  %s345_s10 = scalar_lea.sflag (!%p215_p10), [#allocation3], %s253_s26 }
  0x10   : > { %546 = vset.pattern.permute.xlu0 (!%p215_p10), %v633_v1 }
  0x16   : > { %s257_s29 = scalar_select %p256_p11, %s621_s18, 1 }
  0x18   : > { %s472_s30 = sshll.u32 %s257_s29, 2  ;;  %s474_s5 = sshll.u32 %s257_s29, 3 }
  0x19   : > { %s266_s8 = scalar_lea.vmem %s782_s1, %s472_s30  ;;  %s273_s11 = scalar_lea.vmem %s783_s2, %s474_s5 }
  0x1a   : > { %v279_v2 = vld [vmem:[%s266_s8] sm:$0xf]  ;;  %s262_s14 = scalar_lea.vmem %s781_s0, %s472_s30  ;;  %s276_s24 = scalar_lea.vmem %s784_s3, %s257_s29 }
  0x1b   : > { %483 = vmatpush3.bf16.xpose.msra.mxu0 %v279_v2  ;;  %v320_v3 = vld [vmem:[%s273_s11] sm:$0xff]  ;;  %s471_s29 = sshll.u32 %s253_s26, 3  ;;  %s477_s30 = sshll.u32 %s621_s18, 7 }
  0x1c   : > { %323 = vperm.xlu0 %546, %v320_v3   ;;  %v278_v4 = vld [vmem:[%s262_s14] sm:$0xf]  ;;  %s255_s5 = scalar_lea.vmem [#allocation2], %s471_s29  ;;  %s734_s9 = scalar_lea.hbm %s785_s4, %s477_s30 }
  0x1d   : > { %v475_v7 = vld [vmem:[%s276_s24] ss:$0 sm:$0xff]  ;;  %s359_s6 = sshll.u32 %s255_s5, 4  ;;  %s634_s18 = smov [#allocation2]   ;;  %s736_s6 = int_to_ptr.vmem [resolvable:$true] %s359_s6 }
  0x1e   : > { %s551_s11 = scalar_lea.vmem %s736_s6, 128  ;;  %s555_s12 = sshll.u32 %s634_s18, 4  ;;  %s556_s12 = int_to_ptr.vmem [resolvable:$false] %s555_s12 }
  0x1f   : > { %p552_p12 = scmp.ne.s32.totalorder %s736_s6, %s551_s11  ;;  %s557_s13 = scalar_lea.vmem %s556_s12, 256 }
  0x20   : > { %p558_p1 = scmp.lt.s32.totalorder %s736_s6, %s556_s12  ;;  %p559_p2 = scmp.lt.s32.totalorder %s557_s13, %s551_s11 }
  0x21   : > { %p553_p13 = pnand %p552_p12, %p700_p4 }
  0x22   : > { %485 = vmatmul.mubr.bf16.vlgmr.msra.gmra.mrb[0].mxu0 %v278_v4  ;;  %p560_p3 = por %p559_p2, %p558_p1 }
  0x23   : > { %p554_p0 = pneg %p553_p13 }
  0x25   : > { %p561_p5 = pnand %p560_p3, %p554_p0 }
  0x9b   : > { %v324_v5 = vpop.permute.xlu0 %323 }
  0xf5   : > { %v314_v6 = vpop.f32.mrb[0].mxu0 }
  0xf6   : > { %v326_v8 = vmul.f32 %v324_v5, %v314_v6  ;;  %v486_v9 = vpop.f32.mrb[1].mxu0 }
  0xf7   : > { %v317_v10 = vpop.f32.mrb[2].mxu0 }
  0xf8   : > { %v334_v11 = vmul.f32 %v475_v7, %v326_v8  ;;  %v487_v12 = vpop.f32.mrb[3].mxu0 }
  0xfa   : > { %v335_v13 = vmul.f32 1.442695, %v334_v11 }
  0xfc   : > { %547 = vpow2.f32 %v335_v13 }
 0x106   : > { %v548_v14 = vpop.eup %547 }
 0x107   : > { %v338_v15 = vsel %vm337_vm1, %v548_v14, 0.0 }
 0x108   : > { %339 = vadd.xlane.f32.xlu0 %v338_v15 }
 0x195   : > { %v340_v16 = vpop.xlane.xlu0 %339 }
 0x196   : > { %549 = vrcp.f32 %v340_v16 }
 0x1a0   : > { %v550_v17 = vpop.eup %549 }
 0x1a1   : > { %v342_v18 = vmul.f32 %v550_v17, %v548_v14 }
 0x1a3   : > { %343 = vst.msk [vmem:[%s255_s5] sm:$0xff] %vm337_vm1, %v342_v18 }
 0x1a4   : > { %564 = shalt.err (!%p561_p5)
}
 0x1a5   : > { %s565_s14 = scalar_lea.hbm %s734_s9, 128  ;;  %s569_s24 = scalar_lea.hbm %s785_s4, 256 }
 0x1a6   : > { %p566_p6 = scmp.ne.s32.totalorder %s734_s9, %s565_s14  ;;  %p570_p10 = scmp.lt.u32.totalorder %s734_s9, %s785_s4 }
 0x1a7   : > { %p571_p11 = scmp.lt.u32.totalorder %s569_s24, %s565_s14  ;;  %p573_p13 = scmp.lt.u32.totalorder %s565_s14, %s734_s9 }
 0x1a8   : > { %p567_p7 = pnand %p566_p6, %p700_p4 }
 0x1a9   : > { %p572_p12 = por %p571_p11, %p570_p10 }
 0x1aa   : > { %p568_p9 = pneg %p567_p7 }
 0x1ab   : > { %p574_p0 = por %p573_p13, %p572_p12 }
 0x1ad   : > { %p575_p1 = pnand %p574_p0, %p568_p9 }
 0x1af   : > { %578 = shalt.err (!%p575_p1)
}
 0x1b0   : > { %488 = dma.vmem_to_hbm [thread:$0]  (%p700_p4), %s736_s6, 128, %s734_s9, %s345_s10  }
 0x1b1 PF: > { %p494_p2 = scmp.ge.s32.totalorder %s629_s20, 2  ;;  %s371_s30 = sand.u32 1, %s609_s15  }
 0x1b2   : > { %s372_s5 = scalar_lea.sflag [#allocation3], %s371_s30 }
 0x1b3   : > { %p491_p3 = pnand %p494_p2, %p707_p8 }
 0x1b5   : > { %604 = dma.done.wait (!%p491_p3), %s372_s5, 128  }
 0x1b6   : > { %606 = vsyncadd (!%p491_p3), %s372_s5, 4294967168  ;;  %s17_s20 = sadd.s32 1, %s629_s20   ;;  %s788_s15 = smov %s613_s16 }
 0x1b7   : > { %p14_p5 = scmp.ge.s32.totalorder %s17_s20, 4   ;;  %s789_s16 = smov %s617_s17 }
 0x1b8   : > { %s790_s17 = smov %s713_s28  ;;  %s791_s18 = smov %s625_s19 }
 0x1b9   : > { %s792_s19 = smov %s794_s23  ;;  %16 = sbr.rel (!%p14_p5) target bundleno = 4 (0x4), region = 80 }
 0x1c0   :  { %377 = vsyncpa [#allocation3], 1 }
 0x1c1   :  { %379 = vsyncpa [#allocation3 + $0x1], 1 }

</bundles_post_ra>
